<compile_context>
chip_gen: v7x
topology: tpu7x:2x2x1
jax: 0.10.0
libtpu: 0.0.40
codegen_flags: <defaults>
</compile_context>

<pallas_src>
import functools

import jax
import jax.numpy as jnp
from jax.experimental import pallas as pl
from jax.experimental.pallas import tpu as pltpu


def _round_up(x, m):
    return (x + m - 1) // m * m


# ----------------------------------------------------------------------------
# Kernel 1: edge MLP + per-edge message, once per edge (transposed/lane-dense)
# ----------------------------------------------------------------------------
def edge_message_kernel(et_ref, hsrct_ref, w1t_ref, b1_ref, w2t_ref, b2_ref,
                        mt_ref, *, cin, cout):
    # edge MLP, transposed: Linear -> ReLU -> Linear; every intermediate is
    # [features, te] with te (>=128) on the lane axis.
    hidden = jnp.dot(w1t_ref[...], et_ref[...],
                     preferred_element_type=jnp.float32) + b1_ref[...]
    hidden = jnp.maximum(hidden, 0.0)
    wflat_t = jnp.dot(w2t_ref[...], hidden,
                      preferred_element_type=jnp.float32) + b2_ref[...]

    # mT[o, e] = sum_c hsrc[e, c] * W[e, c, o]
    # Cin full-width (te-lane) multiplies summed with a balanced tree (short
    # dependency chain; no hrep materialization, no 16-lane partial slices).
    parts = [hsrct_ref[c:c + 1, :] * wflat_t[c * cout:(c + 1) * cout, :]
             for c in range(cin)]
    while len(parts) > 1:
        nxt = [parts[i] + parts[i + 1] for i in range(0, len(parts) - 1, 2)]
        if len(parts) % 2:
            nxt.append(parts[-1])
        parts = nxt
    mt_ref[...] = parts[0].astype(mt_ref.dtype)


# ----------------------------------------------------------------------------
# Kernel 2: scatter-sum by destination node (one-hot matmul) + root/bias update
# ----------------------------------------------------------------------------
def scatter_update_kernel(mt_ref, s_ref, ht_ref, roott_ref, bias_ref, out_ref):
    k = pl.program_id(1)

    # init the (resident, lane-dense) output block with the root/bias term
    @pl.when(k == 0)
    def _():
        out_ref[...] = (jnp.dot(roott_ref[...], ht_ref[...],
                                preferred_element_type=jnp.float32)
                        + bias_ref[...])

    # scatter-sum on the MXU: bf16 x bf16 operands, f32 accumulation directly
    # into the output block (its index is constant across k -> no scratch).
    out_ref[...] += jnp.dot(mt_ref[...], s_ref[...],
                            preferred_element_type=jnp.float32)


# ----------------------------------------------------------------------------
# Tile plan: lane-axis tiles (multiples of 128) sized from the device VMEM
# ----------------------------------------------------------------------------
def _tile_plan(N, E, Cin, Cout, tile_n, tile_e):
    tn = min(_round_up(tile_n, 128), _round_up(N, 128))
    te = min(_round_up(tile_e, 128), _round_up(E, 128))

    # >= 2 node tiles when possible so the "parallel" axis feeds both v7x TCs.
    n128 = _round_up(N, 128)
    if n128 >= 256:
        tn = min(tn, _round_up(n128 // 2, 128))

    try:
        vmem_cap = pltpu.get_tpu_info().vmem_capacity_bytes
    except Exception:  # interpret mode / info unavailable: assume v7x (64 MiB)
        vmem_cap = 64 * 1024 * 1024
    vmem_limit = min(int(vmem_cap * 0.75), 100 * 1024 * 1024)
    budget = int(vmem_limit * 0.80)

    def working_set(tn_, te_):
        # kernel-2 double-buffered streams + resident output (dominant term;
        # kernel-1's [Cin*Cout, te] f32 intermediate is far smaller).
        s_bytes = 2 * te_ * tn_ * 2           # S tile, bf16
        m_bytes = 2 * Cout * te_ * 2          # mT tile, bf16
        h_bytes = 2 * Cin * tn_ * 4           # h^T tile, f32
        o_bytes = 2 * Cout * tn_ * 4          # out tile, f32
        return s_bytes + m_bytes + h_bytes + o_bytes

    while working_set(tn, te) > budget and te > 128:
        te = max(128, (te // 2) // 128 * 128)
    while working_set(tn, te) > budget and tn > 128:
        tn = max(128, (tn // 2) // 128 * 128)
    return tn, te, vmem_limit


# ----------------------------------------------------------------------------
# Wrapper: padding / transposed glue + the two pallas_calls
# ----------------------------------------------------------------------------
def nnconv_forward(src, dst, h, e, params, *, tile_n=1024, tile_e=4096,
                   message_dtype=jnp.bfloat16):
    """Pallas forward of NNConvLayer. Returns new node features [N, Cout].

    message_dtype=bfloat16 (default) rounds each per-edge message once; pass
    float32 for strict f32 parity with the reference (slower MXU path).
    """
    W1, b1, W2, b2, root, bias = params
    N, Cin = h.shape
    E, De = e.shape
    H = W1.shape[1]
    Cout = root.shape[1]
    CinCout = Cin * Cout

    tn, te, vmem_limit = _tile_plan(N, E, Cin, Cout, tile_n, tile_e)
    N_pad = _round_up(N, tn)
    E_pad = _round_up(E, te)

    # --- transposed, zero-padded glue (features on sublanes, edges/nodes on
    #     lanes).  Padded edges have hsrc == 0 -> their message is exactly 0.
    e_t = jnp.pad(e.astype(jnp.float32).T, ((0, 0), (0, E_pad - E)))          # [De, E_pad]
    hsrc_t = jnp.pad(h[src].astype(jnp.float32).T, ((0, 0), (0, E_pad - E)))  # [Cin, E_pad]
    h_t = jnp.pad(h.astype(jnp.float32).T, ((0, 0), (0, N_pad - N)))          # [Cin, N_pad]
    # Dense 0/1 scatter matrix, bf16 (exact). Padded edge rows are explicit zeros.
    # TODO(synk): for large graphs replace this O(N*E) one-hot matmul with
    # dst-sorted edges + PrefetchScalarGridSpec grouped segment accumulation.
    s_mat = jnp.pad(jax.nn.one_hot(dst, N_pad, dtype=jnp.bfloat16),
                    ((0, E_pad - E), (0, 0)))                                 # [E_pad, N_pad]

    w1_t = W1.T                           # [H, De]
    w2_t = W2.T                           # [CinCout, H]
    root_t = root.T                       # [Cout, Cin]
    b1_c = b1.reshape(H, 1)
    b2_c = b2.reshape(CinCout, 1)
    bias_c = bias.reshape(Cout, 1)

    # --- kernel 1: per-edge message, grid over edge tiles only ------------
    mt = pl.pallas_call(
        functools.partial(edge_message_kernel, cin=Cin, cout=Cout),
        grid=(E_pad // te,),
        in_specs=[
            pl.BlockSpec((De, te), lambda k: (0, k)),        # e^T tile
            pl.BlockSpec((Cin, te), lambda k: (0, k)),       # h[src]^T tile
            pl.BlockSpec((H, De), lambda k: (0, 0)),         # W1^T (resident)
            pl.BlockSpec((H, 1), lambda k: (0, 0)),          # b1
            pl.BlockSpec((CinCout, H), lambda k: (0, 0)),    # W2^T (resident)
            pl.BlockSpec((CinCout, 1), lambda k: (0, 0)),    # b2
        ],
        out_specs=pl.BlockSpec((Cout, te), lambda k: (0, k)),
        out_shape=jax.ShapeDtypeStruct((Cout, E_pad), message_dtype),
        compiler_params=pltpu.CompilerParams(
            dimension_semantics=("parallel",),
            vmem_limit_bytes=vmem_limit),
    )(e_t, hsrc_t, w1_t, b1_c, w2_t, b2_c)

    # --- kernel 2: scatter-sum + node update, grid (node, edge) -----------
    out_t = pl.pallas_call(
        scatter_update_kernel,
        grid=(N_pad // tn, E_pad // te),
        in_specs=[
            pl.BlockSpec((Cout, te), lambda n, k: (0, k)),   # mT tile
            # TODO(synk): if profiling shows exposed DMA on this (dominant) S
            # stream, add pipeline_mode=pl.Buffered(3) here.
            pl.BlockSpec((te, tn), lambda n, k: (k, n)),     # S tile (bf16)
            pl.BlockSpec((Cin, tn), lambda n, k: (0, n)),    # h^T tile
            pl.BlockSpec((Cout, Cin), lambda n, k: (0, 0)),  # root^T (resident)
            pl.BlockSpec((Cout, 1), lambda n, k: (0, 0)),    # bias
        ],
        out_specs=pl.BlockSpec((Cout, tn), lambda n, k: (0, n)),
        out_shape=jax.ShapeDtypeStruct((Cout, N_pad), jnp.float32),
        compiler_params=pltpu.CompilerParams(
            dimension_semantics=("parallel", "arbitrary"),
            vmem_limit_bytes=vmem_limit),
    )(mt, s_mat, h_t, root_t, bias_c)

    return out_t.T[:N]


# ----------------------------------------------------------------------------
# Deterministic parameter init (mirrors reset_parameters: xavier_normal with
# gain=1.414 on Linear weights and root; zero biases) + pure-JAX reference.
# ----------------------------------------------------------------------------
def xavier_normal(key, fan_in, fan_out, gain=1.414):
    std = gain * (2.0 / (fan_in + fan_out)) ** 0.5
    return std * jax.random.normal(key, (fan_in, fan_out), dtype=jnp.float32)


def jax_reference(src, dst, h, e, params, message_dtype=jnp.float32):
    W1, b1, W2, b2, root, bias = params
    N, Cin = h.shape
    Cout = root.shape[1]
    wflat = jnp.maximum(e @ W1 + b1, 0.0) @ W2 + b2
    w = wflat.reshape(-1, Cin, Cout)
    m = jnp.einsum('ec,eco->eo', h[src], w)
    m = m.astype(message_dtype).astype(jnp.float32)
    aggr = jax.ops.segment_sum(m, dst, num_segments=N)
    return h @ root + aggr + bias


if __name__ == "__main__":
    key = jax.random.PRNGKey(0)
    N, E = 200, 300        # nodes, edges (pads to 256 x 384 with 128-tiles)
    Cin, Cout = 8, 16      # in_channels, out_channels (Cin*Cout = 128)
    De, H = 4, 32          # edge-feature dim, edge-net hidden dim

    ks = jax.random.split(key, 8)
    # edge_net = Linear(De, H) -> ReLU -> Linear(H, Cin*Cout)
    W1 = xavier_normal(ks[0], De, H)
    b1 = jnp.zeros((H,), jnp.float32)
    W2 = xavier_normal(ks[1], H, Cin * Cout)
    b2 = jnp.zeros((Cin * Cout,), jnp.float32)
    root = xavier_normal(ks[2], Cin, Cout)
    bias = jnp.zeros((Cout,), jnp.float32)
    params = (W1, b1, W2, b2, root, bias)

    h = jax.random.normal(ks[3], (N, Cin), dtype=jnp.float32)
    e = jax.random.normal(ks[4], (E, De), dtype=jnp.float32)
    src = jax.random.randint(ks[5], (E,), 0, N, dtype=jnp.int32)
    dst = jax.random.randint(ks[6], (E,), 0, N, dtype=jnp.int32)

    ref = jax_reference(src, dst, h, e, params)

    # small tiles so the demo exercises a real 2 (node, parallel) x 3 (edge,
    # reduction) grid; production calls use the VMEM-derived defaults.
    # 1) strict-f32 message path: tight check against the f32 reference.
    out_f32 = nnconv_forward(src, dst, h, e, params, tile_n=128, tile_e=128,
                             message_dtype=jnp.float32)
    out_f32 = jax.block_until_ready(out_f32)
    assert out_f32.shape == (N, Cout)
    assert jnp.allclose(out_f32, ref, atol=1e-4, rtol=1e-4), "mismatch (f32 path)"

    # 2) default bf16-message path (perf-review recommendation): messages are
    #    rounded once to bf16, so results are allclose (not bitwise) vs f32.
    out = nnconv_forward(src, dst, h, e, params, tile_n=128, tile_e=128)
    out = jax.block_until_ready(out)
    assert out.shape == (N, Cout)
    assert jnp.allclose(out, ref, atol=5e-2, rtol=5e-2), "mismatch (bf16 path)"

    print("KERNEL_OK")
</pallas_src>

<mosaic_0001>
module attributes {stable_mosaic.version = 11 : i64} {
  func.func @edge_message_kernel(%arg0: i32, %arg1: memref<4x128xf32, #tpu.memory_space<vmem>>, %arg2: memref<8x128xf32, #tpu.memory_space<vmem>>, %arg3: memref<32x4xf32, #tpu.memory_space<vmem>>, %arg4: memref<32x1xf32, #tpu.memory_space<vmem>>, %arg5: memref<128x32xf32, #tpu.memory_space<vmem>>, %arg6: memref<128x1xf32, #tpu.memory_space<vmem>>, %arg7: memref<16x128xf32, #tpu.memory_space<vmem>>) attributes {dimension_semantics = [#tpu.dimension_semantics<parallel>], iteration_bounds = array<i64: 3>, scalar_prefetch = 0 : i64, scratch_operands = 0 : i64, tpu.core_type = #tpu.core_type<tc>, window_params = [{transform_indices = @transform_0, window_bounds = array<i64: 4, 128>}, {transform_indices = @transform_1, window_bounds = array<i64: 8, 128>}, {pipeline_mode = #tpu.pipeline_mode<synchronous>, transform_indices = @transform_2, window_bounds = array<i64: 32, 4>}, {pipeline_mode = #tpu.pipeline_mode<synchronous>, transform_indices = @transform_3, window_bounds = array<i64: 32, 1>}, {pipeline_mode = #tpu.pipeline_mode<synchronous>, transform_indices = @transform_4, window_bounds = array<i64: 128, 32>}, {pipeline_mode = #tpu.pipeline_mode<synchronous>, transform_indices = @transform_5, window_bounds = array<i64: 128, 1>}, {transform_indices = @transform_6, window_bounds = array<i64: 16, 128>}]} {
    %c0 = arith.constant 0 : index
    %c0_0 = arith.constant 0 : index
    %0 = vector.load %arg3[%c0, %c0_0] : memref<32x4xf32, #tpu.memory_space<vmem>>, vector<32x4xf32>
    %c0_1 = arith.constant 0 : index
    %c0_2 = arith.constant 0 : index
    %1 = vector.load %arg1[%c0_1, %c0_2] : memref<4x128xf32, #tpu.memory_space<vmem>>, vector<4x128xf32>
    %cst = arith.constant dense<0.000000e+00> : vector<32x128xf32>
    %2 = tpu.matmul %0, %1, %cst {dimension_numbers = #tpu.dot_dimension_numbers<[1], [0], [0], [1], [0, 0, 1, 1], [], []>} : vector<32x4xf32>, vector<4x128xf32>, vector<32x128xf32> -> vector<32x128xf32>
    %c0_3 = arith.constant 0 : index
    %c0_4 = arith.constant 0 : index
    %3 = vector.load %arg4[%c0_3, %c0_4] : memref<32x1xf32, #tpu.memory_space<vmem>>, vector<32x1xf32>
    %4 = vector.broadcast %3 : vector<32x1xf32> to vector<32x128xf32>
    %5 = arith.addf %2, %4 : vector<32x128xf32>
    %cst_5 = arith.constant 0.000000e+00 : f32
    %6 = vector.broadcast %cst_5 : f32 to vector<32x128xf32>
    %7 = arith.maximumf %5, %6 : vector<32x128xf32>
    %c0_6 = arith.constant 0 : index
    %c0_7 = arith.constant 0 : index
    %8 = vector.load %arg5[%c0_6, %c0_7] : memref<128x32xf32, #tpu.memory_space<vmem>>, vector<128x32xf32>
    %cst_8 = arith.constant dense<0.000000e+00> : vector<128x128xf32>
    %9 = tpu.matmul %8, %7, %cst_8 {dimension_numbers = #tpu.dot_dimension_numbers<[1], [0], [0], [1], [0, 0, 1, 1], [], []>} : vector<128x32xf32>, vector<32x128xf32>, vector<128x128xf32> -> vector<128x128xf32>
    %c0_9 = arith.constant 0 : index
    %c0_10 = arith.constant 0 : index
    %10 = vector.load %arg6[%c0_9, %c0_10] : memref<128x1xf32, #tpu.memory_space<vmem>>, vector<128x1xf32>
    %11 = vector.broadcast %10 : vector<128x1xf32> to vector<128x128xf32>
    %12 = arith.addf %9, %11 : vector<128x128xf32>
    %c0_11 = arith.constant 0 : index
    %c0_12 = arith.constant 0 : index
    %13 = vector.load %arg2[%c0_11, %c0_12] : memref<8x128xf32, #tpu.memory_space<vmem>>, vector<1x128xf32>
    %14 = vector.extract_strided_slice %12 {offsets = [0, 0], sizes = [16, 128], strides = [1, 1]} : vector<128x128xf32> to vector<16x128xf32>
    %15 = vector.broadcast %13 : vector<1x128xf32> to vector<16x128xf32>
    %16 = arith.mulf %15, %14 : vector<16x128xf32>
    %c1 = arith.constant 1 : index
    %c0_13 = arith.constant 0 : index
    %17 = vector.load %arg2[%c1, %c0_13] : memref<8x128xf32, #tpu.memory_space<vmem>>, vector<1x128xf32>
    %18 = vector.extract_strided_slice %12 {offsets = [16, 0], sizes = [16, 128], strides = [1, 1]} : vector<128x128xf32> to vector<16x128xf32>
    %19 = vector.broadcast %17 : vector<1x128xf32> to vector<16x128xf32>
    %20 = arith.mulf %19, %18 : vector<16x128xf32>
    %c2 = arith.constant 2 : index
    %c0_14 = arith.constant 0 : index
    %21 = vector.load %arg2[%c2, %c0_14] : memref<8x128xf32, #tpu.memory_space<vmem>>, vector<1x128xf32>
    %22 = vector.extract_strided_slice %12 {offsets = [32, 0], sizes = [16, 128], strides = [1, 1]} : vector<128x128xf32> to vector<16x128xf32>
    %23 = vector.broadcast %21 : vector<1x128xf32> to vector<16x128xf32>
    %24 = arith.mulf %23, %22 : vector<16x128xf32>
    %c3 = arith.constant 3 : index
    %c0_15 = arith.constant 0 : index
    %25 = vector.load %arg2[%c3, %c0_15] : memref<8x128xf32, #tpu.memory_space<vmem>>, vector<1x128xf32>
    %26 = vector.extract_strided_slice %12 {offsets = [48, 0], sizes = [16, 128], strides = [1, 1]} : vector<128x128xf32> to vector<16x128xf32>
    %27 = vector.broadcast %25 : vector<1x128xf32> to vector<16x128xf32>
    %28 = arith.mulf %27, %26 : vector<16x128xf32>
    %c4 = arith.constant 4 : index
    %c0_16 = arith.constant 0 : index
    %29 = vector.load %arg2[%c4, %c0_16] : memref<8x128xf32, #tpu.memory_space<vmem>>, vector<1x128xf32>
    %30 = vector.extract_strided_slice %12 {offsets = [64, 0], sizes = [16, 128], strides = [1, 1]} : vector<128x128xf32> to vector<16x128xf32>
    %31 = vector.broadcast %29 : vector<1x128xf32> to vector<16x128xf32>
    %32 = arith.mulf %31, %30 : vector<16x128xf32>
    %c5 = arith.constant 5 : index
    %c0_17 = arith.constant 0 : index
    %33 = vector.load %arg2[%c5, %c0_17] : memref<8x128xf32, #tpu.memory_space<vmem>>, vector<1x128xf32>
    %34 = vector.extract_strided_slice %12 {offsets = [80, 0], sizes = [16, 128], strides = [1, 1]} : vector<128x128xf32> to vector<16x128xf32>
    %35 = vector.broadcast %33 : vector<1x128xf32> to vector<16x128xf32>
    %36 = arith.mulf %35, %34 : vector<16x128xf32>
    %c6 = arith.constant 6 : index
    %c0_18 = arith.constant 0 : index
    %37 = vector.load %arg2[%c6, %c0_18] : memref<8x128xf32, #tpu.memory_space<vmem>>, vector<1x128xf32>
    %38 = vector.extract_strided_slice %12 {offsets = [96, 0], sizes = [16, 128], strides = [1, 1]} : vector<128x128xf32> to vector<16x128xf32>
    %39 = vector.broadcast %37 : vector<1x128xf32> to vector<16x128xf32>
    %40 = arith.mulf %39, %38 : vector<16x128xf32>
    %c7 = arith.constant 7 : index
    %c0_19 = arith.constant 0 : index
    %41 = vector.load %arg2[%c7, %c0_19] : memref<8x128xf32, #tpu.memory_space<vmem>>, vector<1x128xf32>
    %42 = vector.extract_strided_slice %12 {offsets = [112, 0], sizes = [16, 128], strides = [1, 1]} : vector<128x128xf32> to vector<16x128xf32>
    %43 = vector.broadcast %41 : vector<1x128xf32> to vector<16x128xf32>
    %44 = arith.mulf %43, %42 : vector<16x128xf32>
    %45 = arith.addf %16, %20 : vector<16x128xf32>
    %46 = arith.addf %24, %28 : vector<16x128xf32>
    %47 = arith.addf %32, %36 : vector<16x128xf32>
    %48 = arith.addf %40, %44 : vector<16x128xf32>
    %49 = arith.addf %45, %46 : vector<16x128xf32>
    %50 = arith.addf %47, %48 : vector<16x128xf32>
    %51 = arith.addf %49, %50 : vector<16x128xf32>
    %c0_20 = arith.constant 0 : index
    %c0_21 = arith.constant 0 : index
    %52 = vector.load %arg7[%c0_20, %c0_21] : memref<16x128xf32, #tpu.memory_space<vmem>>, vector<16x128xf32>
    tpu.vector_store %arg7[%c0_20, %c0_21], %51 {strides = array<i32>} : memref<16x128xf32, #tpu.memory_space<vmem>>, vector<16x128xf32>,
    return
  }
  func.func @transform_0(%arg0: i32) -> (i32, i32) {
    %c0_i32 = arith.constant 0 : i32
    %c0_i32_0 = arith.constant 0 : i32
    return %c0_i32, %arg0 : i32, i32
  }
  func.func @transform_1(%arg0: i32) -> (i32, i32) {
    %c0_i32 = arith.constant 0 : i32
    %c0_i32_0 = arith.constant 0 : i32
    return %c0_i32, %arg0 : i32, i32
  }
  func.func @transform_2(%arg0: i32) -> (i32, i32) {
    %c0_i32 = arith.constant 0 : i32
    %c0_i32_0 = arith.constant 0 : i32
    %c0_i32_1 = arith.constant 0 : i32
    return %c0_i32, %c0_i32_0 : i32, i32
  }
  func.func @transform_3(%arg0: i32) -> (i32, i32) {
    %c0_i32 = arith.constant 0 : i32
    %c0_i32_0 = arith.constant 0 : i32
    %c0_i32_1 = arith.constant 0 : i32
    return %c0_i32, %c0_i32_0 : i32, i32
  }
  func.func @transform_4(%arg0: i32) -> (i32, i32) {
    %c0_i32 = arith.constant 0 : i32
    %c0_i32_0 = arith.constant 0 : i32
    %c0_i32_1 = arith.constant 0 : i32
    return %c0_i32, %c0_i32_0 : i32, i32
  }
  func.func @transform_5(%arg0: i32) -> (i32, i32) {
    %c0_i32 = arith.constant 0 : i32
    %c0_i32_0 = arith.constant 0 : i32
    %c0_i32_1 = arith.constant 0 : i32
    return %c0_i32, %c0_i32_0 : i32, i32
  }
  func.func @transform_6(%arg0: i32) -> (i32, i32) {
    %c0_i32 = arith.constant 0 : i32
    %c0_i32_0 = arith.constant 0 : i32
    return %c0_i32, %arg0 : i32, i32
  }
}

</mosaic_0001>

<bundles_post_ra>
// kernel: tpu_custom_call.1
= control target key start
LH: loop header
LB: loop body
LE: loop exit
PB: predicated region body
PF: predicated region fallthrough
CT: control target
= control target key end

     0   :  { %11 = vsyncpa [#allocation3], 0  ;;  %s1394_s0 = inlined_call_operand.vmem [shape: f32[4,384], index: 0, kind: input, shape index: {}]   ;;  %s1395_s1 = inlined_call_operand.vmem [shape: f32[8,384], index: 1, kind: input, shape index: {}]   ;;  %s1396_s2 = inlined_call_operand.vmem [shape: f32[32,4], index: 2, kind: input, shape index: {}]   ;;  %s1397_s3 = inlined_call_operand.vmem [shape: f32[32,1], index: 3, kind: input, shape index: {}]   ;;  %s1398_s4 = inlined_call_operand.vmem [shape: f32[128,32], index: 4, kind: input, shape index: {}]   ;;  %s1399_s5 = inlined_call_operand.vmem [shape: f32[128,1], index: 5, kind: input, shape index: {}]   ;;  %s1400_s6 = inlined_call_operand.hbm [shape: f32[16,384], index: 6, kind: output, shape index: {}]  }
   0x1   :  { %13 = vsyncpa [#allocation3 + $0x1], 0  ;;  %s1130_s21 = smov 0   ;;  %s1132_s22 = smov 0  }
   0x2   :  { %s1134_s23 = smov 0   ;;  %s1136_s24 = smov 0  }
   0x3 LB: > { %s1151_s25 = sadd.s32 4294967295, %s1088_s24   ;;  %s864_s26 = sadd.s32 4294967294, %s1088_s24   ;;  %s1088_s24 = sphi %s1136_s24, %s1406_s24   ;;  %s1084_s23 = sphi %s1134_s23, %s1405_s23   ;;  %s1080_s22 = sphi %s1132_s22, %s1404_s22   ;;  %s1076_s21 = sphi %s1130_s21, %s1403_s21  }
   0x4   : > { %s1155_s27 = sadd.s32 1, %s1088_s24   ;;  %s162_s28 = sadd.s32 1, %s1084_s23 }
   0x5   : > { %s159_s29 = ssub.s32 %s1088_s24, %s1155_s27  ;;  %p172_p0 = scmp.ne.s32.totalorder %s1084_s23, %s1080_s22 }
   0x6   : > { %p160_p1 = scmp.eq.s32.totalorder %s159_s29, 0  ;;  %p173_p2 = scmp.eq.s32.totalorder %s1151_s25, 2 }
   0x7   : > { %p178_p3 = scmp.ne.s32.totalorder %s1080_s22, %s1076_s21  ;;  %p179_p4 = scmp.eq.s32.totalorder %s864_s26, 2 }
   0x8   : > { %s1166_s30 = scalar_select %p160_p1, %s1084_s23, %s162_s28  }
   0x9   : > { %p1168_p5 = por %p173_p2, %p172_p0  ;;  %p1172_p6 = por %p179_p4, %p178_p3 }
   0xa   : > { %p867_p7 = scmp.ge.s32.totalorder %s1088_s24, 1  ;;  %p223_p8 = scmp.lt.s32.totalorder %s1088_s24, 4 }
   0xc   : > { %p224_p9 = pnand %p867_p7, %p223_p8 }
   0xd   : > { %p256_p10 = scmp.lt.s32.totalorder (!%p224_p9), %s1151_s25, 2  ;;  %v264_v0 = vld [vmem:[%s1396_s2] sm:$0xff] (!%p224_p9)  ;;  %vm293_vm0 = vcmask (!%p224_p9), 31744   ;;  %v271_v2 = vld [vmem:[%s1397_s3 + $0x10] sm:$0xff] (!%p224_p9)  ;;  %v1090_v3 = vmov (!%p224_p9), 0   ;;  %vm306_vm1 = vcmask (!%p224_p9), 1043456  }
   0xe   : > { %227 = sbr.rel (%p224_p9) target bundleno = 510 (0x1fe), region = 44  ;;  %931 = vmatprep.mubr.msk.f32.mxu0 (!%p224_p9), %vm293_vm0, %v264_v0  ;;  %v269_v1 = vld [vmem:[%s1397_s3] sm:$0xff] (!%p224_p9)  ;;  %1024 = vset.pattern.permute.xlu0 (!%p224_p9), %v1090_v3  ;;  %v270_v4 = vld [vmem:[%s1397_s3 + $0x8] sm:$0xff] (!%p224_p9)  ;;  %v272_v5 = vld [vmem:[%s1397_s3 + $0x18] sm:$0xff] (!%p224_p9)  ;;  %vm511_vm2 = vcmask (!%p224_p9), 261120   ;;  %s901_s17 = sshll.u32 (!%p224_p9), %s1151_s25, 7 }
   0xf   : > { %1025 = vset.pattern.permute.xlu1 (!%p224_p9), %v1090_v3  ;;  %275 = vperm.xlu0 (!%p224_p9), %1024, %v269_v1   ;;  %v265_v7 = vld [vmem:[%s1396_s2 + $0x8] sm:$0xff] (!%p224_p9)  ;;  %v266_v8 = vld [vmem:[%s1396_s2 + $0x10] sm:$0xff] (!%p224_p9)  ;;  %v415_v9 = vld [vmem:[%s1399_s5] sm:$0xff] (!%p224_p9)  ;;  %s1349_s20 = scalar_lea.hbm (!%p224_p9), %s1400_s6, %s901_s17  ;;  %s1091_s28 = smov (!%p224_p9), [#allocation2]  }
  0x10   : > { %285 = vperm.xlu1 (!%p224_p9), %1025, %v271_v2   ;;  %v416_v10 = vld [vmem:[%s1399_s5 + $0x8] sm:$0xff] (!%p224_p9)  ;;  %v267_v11 = vld [vmem:[%s1396_s2 + $0x18] sm:$0xff] (!%p224_p9)  ;;  %v417_v12 = vld [vmem:[%s1399_s5 + $0x10] sm:$0xff] (!%p224_p9)  ;;  %s1030_s29 = sshll.u32 (!%p224_p9), %s1091_s28, 4  ;;  %s1031_s29 = int_to_ptr.vmem [resolvable:$false] %s1030_s29 }
  0x11   : > { %v418_v13 = vld [vmem:[%s1399_s5 + $0x18] sm:$0xff] (!%p224_p9)  ;;  %v419_v14 = vld [vmem:[%s1399_s5 + $0x20] sm:$0xff] (!%p224_p9)  ;;  %v420_v15 = vld [vmem:[%s1399_s5 + $0x28] sm:$0xff] (!%p224_p9) }
  0x12   : > { %v421_v16 = vld [vmem:[%s1399_s5 + $0x30] sm:$0xff] (!%p224_p9)  ;;  %v422_v17 = vld [vmem:[%s1399_s5 + $0x38] sm:$0xff] (!%p224_p9)  ;;  %v423_v18 = vld [vmem:[%s1399_s5 + $0x40] sm:$0xff] (!%p224_p9) }
  0x13   : > { %280 = vperm.xlu0 (!%p224_p9), %1024, %v270_v4   ;;  %v424_v19 = vld [vmem:[%s1399_s5 + $0x48] sm:$0xff] (!%p224_p9)  ;;  %v425_v20 = vld [vmem:[%s1399_s5 + $0x50] sm:$0xff] (!%p224_p9)  ;;  %v426_v21 = vld [vmem:[%s1399_s5 + $0x58] sm:$0xff] (!%p224_p9) }
  0x14   : > { %290 = vperm.xlu1 (!%p224_p9), %1025, %v272_v5   ;;  %v427_v22 = vld [vmem:[%s1399_s5 + $0x60] sm:$0xff] (!%p224_p9)  ;;  %v428_v23 = vld [vmem:[%s1399_s5 + $0x68] sm:$0xff] (!%p224_p9)  ;;  %v429_v24 = vld [vmem:[%s1399_s5 + $0x70] sm:$0xff] (!%p224_p9) }
  0x15   : > { %s1190_s15 = scalar_select %p256_p10, %s1151_s25, 2  ;;  %v430_v25 = vld [vmem:[%s1399_s5 + $0x78] sm:$0xff]  ;;  %v399_v26 = vld [vmem:[%s1398_s4] sm:$0xff]  ;;  %v405_v27 = vld [vmem:[%s1398_s4 + $0x30] sm:$0xff] }
  0x16   : > { %954 = vmatprep.mubr.msk.f32.mxu1 %vm511_vm2, %v405_v27  ;;  %v400_v46 = vld [vmem:[%s1398_s4 + $0x8] sm:$0xff]  ;;  %v406_v47 = vld [vmem:[%s1398_s4 + $0x38] sm:$0xff]  ;;  %v401_v48 = vld [vmem:[%s1398_s4 + $0x10] sm:$0xff] }
  0x17   : > { %s869_s16 = sshll.u32 %s1190_s15, 2  ;;  %433 = vperm.xlu0 %1024, %v415_v9   ;;  %v407_v49 = vld [vmem:[%s1398_s4 + $0x40] sm:$0xff]  ;;  %v402_v50 = vld [vmem:[%s1398_s4 + $0x18] sm:$0xff]  ;;  %v408_v51 = vld [vmem:[%s1398_s4 + $0x48] sm:$0xff]  ;;  %s870_s9 = sshll.u32 %s1190_s15, 3 }
  0x18   : > { %s259_s26 = scalar_lea.vmem %s1394_s0, %s869_s16  ;;  %438 = vperm.xlu1 %1025, %v416_v10   ;;  %v403_v52 = vld [vmem:[%s1398_s4 + $0x20] sm:$0xff]  ;;  %v409_v53 = vld [vmem:[%s1398_s4 + $0x50] sm:$0xff]  ;;  %v404_v54 = vld [vmem:[%s1398_s4 + $0x28] sm:$0xff]  ;;  %s1330_s12 = scalar_lea.vmem %s1395_s1, %s870_s9 }
  0x19   : > { %v268_v6 = vld [vmem:[%s259_s26] sm:$0xf]  ;;  %v410_v55 = vld [vmem:[%s1398_s4 + $0x58] sm:$0xff]  ;;  %v412_v57 = vld [vmem:[%s1398_s4 + $0x68] sm:$0xff]  ;;  %s253_s15 = sand.u32 1, %s1080_s22   ;;  %s1032_s9 = scalar_lea.vmem %s1031_s29, 512 }
  0x1a   : > { %929 = vmatprep.subr.msk.mxu0 %vm306_vm1, %v268_v6  ;;  %v411_v56 = vld [vmem:[%s1398_s4 + $0x60] sm:$0xff]  ;;  %v413_v58 = vld [vmem:[%s1398_s4 + $0x70] sm:$0xff]  ;;  %v414_v59 = vld [vmem:[%s1398_s4 + $0x78] sm:$0xff]  ;;  %s868_s13 = sshll.u32 %s253_s15, 4  ;;  %s1353_s26 = scalar_lea.sflag [#allocation3], %s253_s15 }
  0x1b   : > { %930 = vmatpush3.msk.msra.mxu0 %vm306_vm1, %v268_v6  ;;  %443 = vperm.xlu0 %1024, %v417_v12   ;;  %v895_v9 = vld [vmem:[%s1330_s12 + $0x3] ss:$0 sm:$0xff]  ;;  %s255_s14 = scalar_lea.vmem [#allocation2], %s868_s13 }
  0x1c   : > { %932 = vmatmul.mubr.msk.f32.vlgmr.msra.gmra.mrb[0].mxu0 %vm293_vm0, %v265_v7  ;;  %448 = vperm.xlu1 %1025, %v418_v13   ;;  %v892_v7 = vld [vmem:[%s1330_s12] ss:$0 sm:$0xff]  ;;  %s790_s16 = sshll.u32 %s255_s14, 4  ;;  %s1344_s16 = int_to_ptr.vmem [resolvable:$true] %s790_s16 }
  0x1d   : > { %934 = vmatprep.mubr.msk.f32.mxu0 %vm293_vm0, %v266_v8  ;;  %s1026_s25 = scalar_lea.vmem %s1344_s16, 256  ;;  %p1033_p0 = scmp.lt.s32.totalorder %s1344_s16, %s1031_s29 }
  0x1e   : > { %p1027_p11 = scmp.ne.s32.totalorder %s1344_s16, %s1026_s25  ;;  %p1034_p1 = scmp.lt.s32.totalorder %s1032_s9, %s1026_s25 }
  0x1f   : > { %453 = vperm.xlu0 %1024, %v419_v14  }
  0x20   : > { %935 = vmatmul.mubr.msk.f32.gmra.mrb[2].mxu0 %vm293_vm0, %v267_v11  ;;  %458 = vperm.xlu1 %1025, %v420_v15   ;;  %p1028_p12 = pnand %p1027_p11, %p1168_p5  ;;  %p1035_p2 = por %p1034_p1, %p1033_p0 }
  0x21   : > { %945 = vmatprep.mubr.msk.f32.mxu0 %vm511_vm2, %v399_v26 }
  0x22   : > { %p1029_p13 = pneg %p1028_p12 }
  0x23   : > { %463 = vperm.xlu0 %1024, %v421_v16  }
  0x24   : > { %468 = vperm.xlu1 %1025, %v422_v17   ;;  %p1036_p3 = pnand %p1035_p2, %p1029_p13 }
  0x27   : > { %473 = vperm.xlu0 %1024, %v423_v18  }
  0x28   : > { %478 = vperm.xlu1 %1025, %v424_v19  }
  0x2b   : > { %483 = vperm.xlu0 %1024, %v425_v20  }
  0x2c   : > { %488 = vperm.xlu1 %1025, %v426_v21  }
  0x2f   : > { %493 = vperm.xlu0 %1024, %v427_v22  }
  0x30   : > { %498 = vperm.xlu1 %1025, %v428_v23   ;;  %v893_v23 = vld [vmem:[%s1330_s12 + $0x1] ss:$0 sm:$0xff] }
  0x33   : > { %503 = vperm.xlu0 %1024, %v429_v24  }
  0x34   : > { %508 = vperm.xlu1 %1025, %v430_v25   ;;  %v896_v25 = vld [vmem:[%s1330_s12 + $0x4] ss:$0 sm:$0xff] }
  0x8e   : > { %v276_v28 = vpop.permute.xlu0 %275 }
  0x8f   : > { %v286_v29 = vpop.permute.xlu1 %285 }
  0x92   : > { %v281_v30 = vpop.permute.xlu0 %280 }
  0x93   : > { %v291_v36 = vpop.permute.xlu1 %290 }
  0x96   : > { %v434_v60 = vpop.permute.xlu0 %433 }
  0x97   : > { %v439_v61 = vpop.permute.xlu1 %438 }
  0x9a   : > { %v444_v62 = vpop.permute.xlu0 %443 }
  0x9b   : > { %v449_v63 = vpop.permute.xlu1 %448 }
  0x9e   : > { %v454_v0 = vpop.permute.xlu0 %453 }
  0x9f   : > { %v459_v1 = vpop.permute.xlu1 %458 }
  0xa2   : > { %v464_v2 = vpop.permute.xlu0 %463 }
  0xa3   : > { %v469_v3 = vpop.permute.xlu1 %468 }
  0xa6   : > { %v474_v4 = vpop.permute.xlu0 %473 }
  0xa7   : > { %v479_v5 = vpop.permute.xlu1 %478 }
  0xaa   : > { %v484_v16 = vpop.permute.xlu0 %483 }
  0xab   : > { %v489_v17 = vpop.permute.xlu1 %488 }
  0xef   : > { %v933_v31 = vpop.f32.mrb[0].mxu0 }
  0xf0   : > { %v382_v32 = vadd.f32 %v933_v31, %v281_v30  ;;  %v376_v33 = vpop.f32.mrb[1].mxu0 }
  0xf1   : > { %v377_v34 = vadd.f32 %v376_v33, %v276_v28 }
  0xf2   : > { %v396_v35 = vmax.f32 %v382_v32, 0.0 }
  0xf3   : > { %v395_v37 = vmax.f32 %v377_v34, 0.0  ;;  %v936_v38 = vpop.f32.mrb[2].mxu0 }
  0xf4   : > { %v392_v39 = vadd.f32 %v936_v38, %v291_v36  ;;  %v386_v40 = vpop.f32.mrb[3].mxu0 }
  0xf5   : > { %v969_v41 = vpack.c.bf16 %v396_v35, %v395_v37  ;;  %v387_v42 = vadd.f32 %v386_v40, %v286_v29  ;;  %v894_v37 = vld [vmem:[%s1330_s12 + $0x2] ss:$0 sm:$0xff] }
  0xf6   : > { %v398_v43 = vmax.f32 %v392_v39, 0.0  ;;  %v897_v39 = vld [vmem:[%s1330_s12 + $0x5] ss:$0 sm:$0xff] }
  0xf7   : > { %v397_v44 = vmax.f32 %v387_v42, 0.0  ;;  %970 = vmatprep.subr.bf16.mxu0 %v969_v41  ;;  %977 = vmatprep.subr.bf16.mxu1 %v969_v41 }
  0xf8   : > { %972 = vmatpush3.bf16.msra.mxu0 %v969_v41  ;;  %979 = vmatpush3.bf16.msra.mxu1 %v969_v41 }
  0xf9   : > { %v973_v45 = vpack.c.bf16 %v398_v43, %v397_v44 }
  0xfb   : > { %974 = vmatprep.subr.bf16.mxu0 %v973_v45  ;;  %978 = vmatprep.subr.bf16.mxu1 %v973_v45 }
  0xfc   : > { %976 = vmatpush3.bf16.msra.mxu0 %v973_v45  ;;  %980 = vmatpush3.bf16.msra.mxu1 %v973_v45  ;;  %v499_v45 = vpop.permute.xlu1 %498 }
  0xff   : > { %946 = vmatmul.mubr.msk.f32.vlgmr.msra.gmra.mrb[4].mxu0 %vm511_vm2, %v400_v46  ;;  %955 = vmatmul.mubr.msk.f32.vlgmr.msra.gmra.mrb[0].mxu1 %vm511_vm2, %v406_v47 }
 0x100   : > { %948 = vmatprep.mubr.msk.f32.mxu0 %vm511_vm2, %v401_v48  ;;  %957 = vmatprep.mubr.msk.f32.mxu1 %vm511_vm2, %v407_v49  ;;  %v494_v49 = vpop.permute.xlu0 %493 }
 0x103   : > { %949 = vmatmul.mubr.msk.f32.gmra.mrb[6].mxu0 %vm511_vm2, %v402_v50  ;;  %958 = vmatmul.mubr.msk.f32.gmra.mrb[2].mxu1 %vm511_vm2, %v408_v51 }
 0x104   : > { %951 = vmatprep.mubr.msk.f32.mxu0 %vm511_vm2, %v403_v52  ;;  %960 = vmatprep.mubr.msk.f32.mxu1 %vm511_vm2, %v409_v53 }
 0x107   : > { %952 = vmatmul.mubr.msk.f32.gmra.mrb[8].mxu0 %vm511_vm2, %v404_v54  ;;  %961 = vmatmul.mubr.msk.f32.gmra.mrb[4].mxu1 %vm511_vm2, %v410_v55  ;;  %v898_v55 = vld [vmem:[%s1330_s12 + $0x6] ss:$0 sm:$0xff] }
 0x108   : > { %963 = vmatprep.mubr.msk.f32.mxu1 %vm511_vm2, %v411_v56 }
 0x10b   : > { %964 = vmatmul.mubr.msk.f32.gmra.mrb[6].mxu1 %vm511_vm2, %v412_v57 }
 0x10c   : > { %966 = vmatprep.mubr.msk.f32.mxu1 %vm511_vm2, %v413_v58 }
 0x10f   : > { %967 = vmatmul.mubr.msk.f32.gmra.mrb[8].mxu1 %vm511_vm2, %v414_v59 }
 0x1d2   : > { %v947_v6 = vpop.f32.mrb[4].mxu0  ;;  %v956_v8 = vpop.f32.mrb[0].mxu1 }
 0x1d3   : > { %v632_v10 = vadd.f32 %v947_v6, %v439_v61  ;;  %v662_v11 = vadd.f32 %v956_v8, %v469_v3  ;;  %v626_v12 = vpop.f32.mrb[5].mxu0  ;;  %v656_v13 = vpop.f32.mrb[1].mxu1 }
 0x1d4   : > { %v627_v14 = vadd.f32 %v626_v12, %v434_v60  ;;  %v657_v15 = vadd.f32 %v656_v13, %v464_v2  ;;  %v504_v6 = vpop.permute.xlu0 %503 }
 0x1d5   : > { %v711_v18 = vmul.f32 %v892_v7, %v632_v10  ;;  %v732_v19 = vmul.f32 %v895_v9, %v662_v11 }
 0x1d6   : > { %v710_v20 = vmul.f32 %v892_v7, %v627_v14  ;;  %v731_v21 = vmul.f32 %v895_v9, %v657_v15  ;;  %v950_v22 = vpop.f32.mrb[6].mxu0  ;;  %v959_v24 = vpop.f32.mrb[2].mxu1 }
 0x1d7   : > { %v642_v26 = vadd.f32 %v950_v22, %v449_v63  ;;  %v672_v27 = vadd.f32 %v959_v24, %v479_v5  ;;  %v636_v28 = vpop.f32.mrb[7].mxu0  ;;  %v666_v29 = vpop.f32.mrb[3].mxu1  ;;  %v899_v5 = vld [vmem:[%s1330_s12 + $0x7] ss:$0 sm:$0xff] }
 0x1d8   : > { %v637_v30 = vadd.f32 %v636_v28, %v444_v62  ;;  %v667_v31 = vadd.f32 %v666_v29, %v474_v4 }
 0x1d9   : > { %v718_v32 = vmul.f32 %v893_v23, %v642_v26  ;;  %v739_v33 = vmul.f32 %v896_v25, %v672_v27 }
 0x1da   : > { %v717_v34 = vmul.f32 %v893_v23, %v637_v30  ;;  %v738_v35 = vmul.f32 %v896_v25, %v667_v31  ;;  %v953_v36 = vpop.f32.mrb[8].mxu0  ;;  %v962_v38 = vpop.f32.mrb[4].mxu1 }
 0x1db   : > { %v762_v40 = vadd.f32 %v718_v32, %v711_v18  ;;  %v652_v41 = vadd.f32 %v953_v36, %v459_v1  ;;  %v682_v42 = vadd.f32 %v962_v38, %v489_v17  ;;  %v646_v43 = vpop.f32.mrb[9].mxu0  ;;  %v676_v44 = vpop.f32.mrb[5].mxu1 }
 0x1dc   : > { %v761_v46 = vadd.f32 %v717_v34, %v710_v20  ;;  %v647_v47 = vadd.f32 %v646_v43, %v454_v0  ;;  %v677_v48 = vadd.f32 %v676_v44, %v484_v16  ;;  %v509_v1 = vpop.permute.xlu1 %508 }
 0x1dd   : > { %v725_v50 = vmul.f32 %v894_v37, %v652_v41  ;;  %v746_v51 = vmul.f32 %v897_v39, %v682_v42 }
 0x1de   : > { %v724_v52 = vmul.f32 %v894_v37, %v647_v47  ;;  %v745_v53 = vmul.f32 %v897_v39, %v677_v48  ;;  %v965_v54 = vpop.f32.mrb[6].mxu1 }
 0x1df   : > { %v764_v56 = vadd.f32 %v732_v19, %v725_v50  ;;  %v766_v57 = vadd.f32 %v746_v51, %v739_v33  ;;  %v692_v58 = vadd.f32 %v965_v54, %v499_v45  ;;  %v686_v59 = vpop.f32.mrb[7].mxu1 }
 0x1e0   : > { %v763_v60 = vadd.f32 %v731_v21, %v724_v52  ;;  %v765_v61 = vadd.f32 %v745_v53, %v738_v35  ;;  %v687_v62 = vadd.f32 %v686_v59, %v494_v49 }
 0x1e1   : > { %v770_v63 = vadd.f32 %v764_v56, %v762_v40  ;;  %v753_v0 = vmul.f32 %v898_v55, %v692_v58 }
 0x1e2   : > { %v769_v2 = vadd.f32 %v763_v60, %v761_v46  ;;  %v752_v3 = vmul.f32 %v898_v55, %v687_v62  ;;  %v968_v4 = vpop.f32.mrb[8].mxu1 }
 0x1e3   : > { %v702_v7 = vadd.f32 %v968_v4, %v509_v1  ;;  %v696_v8 = vpop.f32.mrb[9].mxu1 }
 0x1e4   : > { %v697_v9 = vadd.f32 %v696_v8, %v504_v6 }
 0x1e5   : > { %v760_v10 = vmul.f32 %v899_v5, %v702_v7 }
 0x1e6   : > { %v759_v11 = vmul.f32 %v899_v5, %v697_v9 }
 0x1e7   : > { %v768_v12 = vadd.f32 %v760_v10, %v753_v0 }
 0x1e8   : > { %v767_v13 = vadd.f32 %v759_v11, %v752_v3 }
 0x1e9   : > { %v772_v14 = vadd.f32 %v768_v12, %v766_v57 }
 0x1ea   : > { %v771_v15 = vadd.f32 %v767_v13, %v765_v61 }
 0x1eb   : > { %v774_v16 = vadd.f32 %v772_v14, %v770_v63 }
 0x1ec   : > { %v773_v17 = vadd.f32 %v771_v15, %v769_v2 }
 0x1ed   : > { %776 = vst [vmem:[%s255_s14 + $0x8] sm:$0xff] %v774_v16 }
 0x1ee   : > { %775 = vst [vmem:[%s255_s14] sm:$0xff] %v773_v17 }
 0x1ef   : > { %1039 = shalt.err (!%p1036_p3)
}
 0x1f0   : > { %s1040_s10 = scalar_lea.hbm %s1349_s20, 256  ;;  %s1044_s15 = scalar_lea.hbm %s1400_s6, 768 }
 0x1f1   : > { %p1041_p4 = scmp.ne.s32.totalorder %s1349_s20, %s1040_s10  ;;  %p1045_p9 = scmp.lt.u32.totalorder %s1349_s20, %s1400_s6 }
 0x1f2   : > { %p1046_p10 = scmp.lt.u32.totalorder %s1044_s15, %s1040_s10  ;;  %p1048_p12 = scmp.lt.u32.totalorder %s1040_s10, %s1349_s20 }
 0x1f3   : > { %p1042_p7 = pnand %p1041_p4, %p1168_p5 }
 0x1f4   : > { %p1047_p11 = por %p1046_p10, %p1045_p9 }
 0x1f5   : > { %p1043_p8 = pneg %p1042_p7 }
 0x1f6   : > { %p1049_p13 = por %p1048_p12, %p1047_p11 }
 0x1f8   : > { %p1050_p0 = pnand %p1049_p13, %p1043_p8 }
 0x1fa   : > { %1053 = shalt.err (!%p1050_p0)
}
 0x1fb   : > { %s1092_s17 = smov 128   ;;  %s1093_s18 = smov 384  }
 0x1fc   : > { %s1094_s19 = smov 8  }
 0x1fd   : > { %981 = dma.vmem_to_hbm [thread:$0]  (%p1168_p5), %s1344_s16, 256, %s1349_s20, %s1353_s26, %s1092_s17, %s1093_s18, %s1094_s19  }
 0x1fe PF: > { %p987_p1 = scmp.ge.s32.totalorder %s1088_s24, 2  ;;  %s805_s25 = sand.u32 1, %s1076_s21  }
 0x1ff   : > { %s806_s28 = scalar_lea.sflag [#allocation3], %s805_s25 }
 0x200   : > { %p984_p2 = pnand %p987_p1, %p1172_p6 }
 0x202   : > { %1071 = dma.done.wait (!%p984_p2), %s806_s28, 256  }
 0x203   : > { %1073 = vsyncadd (!%p984_p2), %s806_s28, 4294967040  ;;  %p16_p3 = scmp.ge.s32.totalorder %s1155_s27, 5   ;;  %s1403_s21 = smov %s1080_s22 }
 0x204   : > { %s1404_s22 = smov %s1084_s23  ;;  %s1405_s23 = smov %s1166_s30 }
 0x205   : > { %s1406_s24 = smov %s1155_s27  ;;  %18 = sbr.rel (!%p16_p3) target bundleno = 3 (0x3), region = 82 }
 0x20c   :  { %811 = vsyncpa [#allocation3], 1 }
 0x20d   :  { %813 = vsyncpa [#allocation3 + $0x1], 1 }

</bundles_post_ra>
